<compile_context>
chip_gen: v5e
topology: v5e:2x2
jax: 0.10.0
libtpu: 0.0.40
codegen_flags: <defaults>
</compile_context>

<pallas_src>
import math

import jax
import jax.numpy as jnp
from jax.experimental import pallas as pl
from jax.experimental.pallas import tpu as pltpu


def _pick_tile(n, target, multiple):
    """Largest divisor of `n` that is <= target and a multiple of `multiple`.

    Falls back to `n` (full extent), which is always a legal block size.
    """
    if n <= target:
        return n
    t = (target // multiple) * multiple
    while t >= multiple:
        if n % t == 0:
            return t
        t -= multiple
    return n


def _project_heads(x, w_h, b_h, *, out_dtype, block_l=None,
                   vmem_limit=64 * 1024 * 1024):
    """y[n, h, l, :] = x[n, l, :] @ w_h[h] + b_h[h]  ->  (N, H, L, D)."""
    N, L, E = x.shape
    H, _, D = w_h.shape
    tl = block_l or _pick_tile(L, 256, 8)
    assert L % tl == 0

    def kernel(x_ref, w_ref, b_ref, o_ref):
        xt = x_ref[0]                                         # (tl, E)
        xb = jnp.broadcast_to(xt[None], (H, tl, E))           # replicate over heads
        y = jnp.einsum("hle,hed->hld", xb, w_ref[...],
                       preferred_element_type=jnp.float32)    # (H, tl, D), f32 acc
        y = y + b_ref[...]                                    # (H, 1, D) bias
        o_ref[0] = y.astype(o_ref.dtype)

    grid_spec = pltpu.PrefetchScalarGridSpec(
        num_scalar_prefetch=0,
        grid=(N, L // tl),
        in_specs=[
            pl.BlockSpec((1, tl, E), lambda n, li: (n, li, 0)),
            pl.BlockSpec((H, E, D), lambda n, li: (0, 0, 0)),
            pl.BlockSpec((H, 1, D), lambda n, li: (0, 0, 0)),
        ],
        out_specs=pl.BlockSpec((1, H, tl, D), lambda n, li: (n, 0, li, 0)),
    )
    return pl.pallas_call(
        kernel,
        out_shape=jax.ShapeDtypeStruct((N, H, L, D), out_dtype),
        grid_spec=grid_spec,
        compiler_params=pltpu.CompilerParams(
            dimension_semantics=("parallel", "parallel"),
            vmem_limit_bytes=vmem_limit),
    )(x, w_h, b_h)


def _flash_attention(q_h, k_h, v_h, mask, wo_h, bo, *, out_dtype=jnp.float32,
                     block_q=None, block_k=None, vmem_limit=64 * 1024 * 1024):
    """Head-batched flash attention + fused output projection.

    q_h: (N, H, Lq, D) (already scaled by 1/sqrt(D)); k_h/v_h: (N, H, Lk, D);
    mask: (N, Lq, Lk) int32; wo_h: (H, D, E); bo: (1, E).  Returns (N, Lq, E).
    """
    N, H, Lq, D = q_h.shape
    Lk = k_h.shape[2]
    E = wo_h.shape[-1]
    tq = block_q or _pick_tile(Lq, 256, 8)
    tk = block_k or _pick_tile(Lk, 512, 128)   # mask block last dim: mult of 128 or full
    assert Lq % tq == 0 and Lk % tk == 0

    def kernel(q_ref, k_ref, v_ref, mask_ref, wo_ref, bo_ref, out_ref,
               m_scr, l_scr, acc_scr):
        ki = pl.program_id(2)

        @pl.when(ki == 0)
        def _init():
            m_scr[...] = jnp.full(m_scr.shape, -jnp.inf, m_scr.dtype)
            l_scr[...] = jnp.zeros(l_scr.shape, l_scr.dtype)
            acc_scr[...] = jnp.zeros(acc_scr.shape, acc_scr.dtype)

        q = q_ref[0]                 # (H, tq, D)  compute dtype, pre-scaled
        k = k_ref[0]                 # (H, tk, D)
        v = v_ref[0]                 # (H, tk, D)

        # Batched-over-heads QK^T on the MXU, f32 accumulation.
        s = jnp.einsum("hqd,hkd->hqk", q, k,
                       preferred_element_type=jnp.float32)           # (H, tq, tk)

        # masked_fill(mask == 0, -1e20): single compare+select per tile.
        mask_t = jnp.broadcast_to(mask_ref[0][None, :, :], s.shape)  # int32
        s = jnp.where(mask_t == 0, jnp.float32(-1e20), s)

        # Online (flash) softmax update with f32 statistics.
        m_prev = m_scr[...]                                           # (H, tq, 1)
        m_new = jnp.maximum(m_prev, jnp.max(s, axis=-1, keepdims=True))
        alpha = jnp.exp(m_prev - m_new)
        p = jnp.exp(s - m_new)                                        # (H, tq, tk)
        l_scr[...] = alpha * l_scr[...] + jnp.sum(p, axis=-1, keepdims=True)
        acc_scr[...] = alpha * acc_scr[...] + jnp.einsum(
            "hqk,hkd->hqd", p.astype(v.dtype), v,
            preferred_element_type=jnp.float32)                       # (H, tq, D)
        m_scr[...] = m_new

        @pl.when(ki == pl.num_programs(2) - 1)
        def _finalize():
            # Normalize (EUP approx reciprocal), then fuse fc_out:
            #   concat_h(attn_h) @ Wo + bo == sum_h attn_h @ Wo[h*D:(h+1)*D, :] + bo
            o_h = acc_scr[...] * pl.reciprocal(l_scr[...], approx=True)   # (H, tq, D)
            o_he = jnp.einsum("hqd,hde->hqe", o_h.astype(wo_ref.dtype),
                              wo_ref[...],
                              preferred_element_type=jnp.float32)         # (H, tq, E)
            out = jnp.sum(o_he, axis=0) + bo_ref[...]                     # (tq, E)
            out_ref[0] = out.astype(out_ref.dtype)

    grid_spec = pltpu.PrefetchScalarGridSpec(
        num_scalar_prefetch=0,
        grid=(N, Lq // tq, Lk // tk),
        in_specs=[
            pl.BlockSpec((1, H, tq, D), lambda n, qi, ki: (n, 0, qi, 0)),
            pl.BlockSpec((1, H, tk, D), lambda n, qi, ki: (n, 0, ki, 0)),
            pl.BlockSpec((1, H, tk, D), lambda n, qi, ki: (n, 0, ki, 0)),
            pl.BlockSpec((1, tq, tk), lambda n, qi, ki: (n, qi, ki)),
            pl.BlockSpec((H, D, E), lambda n, qi, ki: (0, 0, 0)),
            pl.BlockSpec((1, E), lambda n, qi, ki: (0, 0)),
        ],
        out_specs=pl.BlockSpec((1, tq, E), lambda n, qi, ki: (n, qi, 0)),
        scratch_shapes=[
            pltpu.VMEM((H, tq, 1), jnp.float32),   # running max
            pltpu.VMEM((H, tq, 1), jnp.float32),   # running denominator
            pltpu.VMEM((H, tq, D), jnp.float32),   # running numerator
        ],
    )
    return pl.pallas_call(
        kernel,
        out_shape=jax.ShapeDtypeStruct((N, Lq, E), out_dtype),
        grid_spec=grid_spec,
        compiler_params=pltpu.CompilerParams(
            dimension_semantics=("parallel", "parallel", "arbitrary"),
            vmem_limit_bytes=vmem_limit),
    )(q_h, k_h, v_h, mask, wo_h, bo)


def self_attention(values, keys, query, mask, params, *, embed_size, heads,
                   compute_dtype=jnp.bfloat16, block_q=None, block_k=None):
    """values/keys: (N, Lk, E); query: (N, Lq, E); mask: (N, Lq, Lk) int32 (0 => masked)."""
    N, Lq, E = query.shape
    Lk = keys.shape[1]
    Lv = values.shape[1]
    assert E == embed_size
    assert E % heads == 0
    assert Lv == Lk, "values length must equal keys length (attn is (Lq,Lk)@(Lk,D))"
    assert mask.shape == (N, Lq, Lk)

    H = heads
    D = E // H
    scale = 1.0 / math.sqrt(D)
    cdt = compute_dtype

    wv, bv, wk, bk, wq, bq, wo, bo = params

    # One-time weight prep (plain XLA): split per head, fold the 1/sqrt(D)
    # softmax scale into the Q projection, cast matmul operands to compute dtype.
    def split_in(w):   # (E, E) -> (H, E, D)
        return jnp.transpose(w.reshape(E, H, D), (1, 0, 2))

    wv_h = split_in(wv).astype(cdt)
    wk_h = split_in(wk).astype(cdt)
    wq_h = split_in(wq * scale).astype(cdt)
    bv_h = bv.reshape(H, 1, D).astype(jnp.float32)
    bk_h = bk.reshape(H, 1, D).astype(jnp.float32)
    bq_h = (bq * scale).reshape(H, 1, D).astype(jnp.float32)
    wo_h = wo.reshape(H, D, E).astype(cdt)        # fc_out, grouped by head rows
    bo2 = bo.reshape(1, E).astype(jnp.float32)

    # Head-split input projections (batched-over-heads MXU matmuls, head-major output).
    v_h = _project_heads(values.astype(cdt), wv_h, bv_h, out_dtype=cdt)
    k_h = _project_heads(keys.astype(cdt), wk_h, bk_h, out_dtype=cdt)
    q_h = _project_heads(query.astype(cdt), wq_h, bq_h, out_dtype=cdt)

    # Flash attention + fused fc_out. (Note: output last dim is E; for real
    # model sizes E is a multiple of 128 so stores are lane-dense/unmasked.)
    return _flash_attention(q_h, k_h, v_h, mask, wo_h, bo2,
                            out_dtype=jnp.float32,
                            block_q=block_q, block_k=block_k)


def reference_self_attention(values, keys, query, mask, params, *, embed_size, heads):
    """Pure-JAX reference mirroring the PyTorch forward exactly."""
    wv, bv, wk, bk, wq, bq, wo, bo = params
    N, Lq, E = query.shape
    Lk = keys.shape[1]
    D = embed_size // heads

    V = values @ wv + bv
    K = keys @ wk + bk
    Q = query @ wq + bq
    V = V.reshape(N, -1, heads, D)
    K = K.reshape(N, Lk, heads, D)
    Q = Q.reshape(N, Lq, heads, D)
    energy = jnp.einsum("nqhd,nkhd->nhqk", Q, K)
    energy = jnp.where(mask[:, None, :, :] == 0, -1e20, energy)
    attn = jax.nn.softmax(energy / math.sqrt(D), axis=3)
    out = jnp.einsum("nhql,nlhd->nqhd", attn, V).reshape(N, Lq, E)
    return out @ wo + bo


if __name__ == "__main__":
    # Small shapes consistent with the module.
    N, L, E, H = 2, 8, 32, 4

    key = jax.random.PRNGKey(0)
    keys_ = jax.random.split(key, 12)

    values = jax.random.normal(keys_[0], (N, L, E), dtype=jnp.float32)
    keys_in = jax.random.normal(keys_[1], (N, L, E), dtype=jnp.float32)
    query = jax.random.normal(keys_[2], (N, L, E), dtype=jnp.float32)
    # lower-triangular (causal-style) mask; 0 => masked
    mask = jnp.tril(jnp.ones((L, L), dtype=jnp.int32))
    mask = jnp.broadcast_to(mask, (N, L, L))

    def init_linear(wk_, bk_, fan_in, fan_out):
        bound = 1.0 / math.sqrt(fan_in)
        w = jax.random.uniform(wk_, (fan_in, fan_out), jnp.float32, -bound, bound)
        b = jax.random.uniform(bk_, (fan_out,), jnp.float32, -bound, bound)
        return w, b

    wv, bv = init_linear(keys_[3], keys_[4], E, E)
    wk, bk = init_linear(keys_[5], keys_[6], E, E)
    wq, bq = init_linear(keys_[7], keys_[8], E, E)
    wo, bo = init_linear(keys_[9], keys_[10], E, E)
    params = (wv, bv, wk, bk, wq, bq, wo, bo)

    ref = reference_self_attention(values, keys_in, query, mask, params,
                                   embed_size=E, heads=H)

    # f32 compute path (tight check; approx reciprocal => sub-1e-3 deviations).
    out_f32 = self_attention(values, keys_in, query, mask, params,
                             embed_size=E, heads=H, compute_dtype=jnp.float32)
    out_f32 = jax.block_until_ready(out_f32)
    assert out_f32.shape == (N, L, E)
    assert jnp.allclose(out_f32, ref, atol=5e-3, rtol=5e-3), "f32 kernel mismatch vs reference"

    # bf16 matmul-operand path (MXU-native; f32 accumulation) — looser check.
    out_bf16 = self_attention(values, keys_in, query, mask, params,
                              embed_size=E, heads=H, compute_dtype=jnp.bfloat16)
    out_bf16 = jax.block_until_ready(out_bf16)
    assert out_bf16.shape == (N, L, E)
    assert jnp.allclose(out_bf16, ref, atol=1e-1, rtol=1e-1), "bf16 kernel mismatch vs reference"

    print("KERNEL_OK")
</pallas_src>

<mosaic_0001>
module attributes {stable_mosaic.version = 11 : i64} {
  func.func @kernel(%arg0: i32, %arg1: i32, %arg2: memref<1x8x32xf32, #tpu.memory_space<vmem>>, %arg3: memref<4x32x8xf32, #tpu.memory_space<vmem>>, %arg4: memref<4x1x8xf32, #tpu.memory_space<vmem>>, %arg5: memref<1x4x8x8xf32, #tpu.memory_space<vmem>>) attributes {dimension_semantics = [#tpu.dimension_semantics<parallel>, #tpu.dimension_semantics<parallel>], iteration_bounds = array<i64: 2, 1>, scalar_prefetch = 0 : i64, scratch_operands = 0 : i64, tpu.core_type = #tpu.core_type<tc>, window_params = [{transform_indices = @transform_0, window_bounds = array<i64: 1, 8, 32>}, {pipeline_mode = #tpu.pipeline_mode<synchronous>, transform_indices = @transform_1, window_bounds = array<i64: 4, 32, 8>}, {pipeline_mode = #tpu.pipeline_mode<synchronous>, transform_indices = @transform_2, window_bounds = array<i64: 4, 1, 8>}, {transform_indices = @transform_3, window_bounds = array<i64: 1, 4, 8, 8>}]} {
    %c0 = arith.constant 0 : index
    %c0_0 = arith.constant 0 : index
    %c0_1 = arith.constant 0 : index
    %0 = vector.load %arg2[%c0, %c0_0, %c0_1] : memref<1x8x32xf32, #tpu.memory_space<vmem>>, vector<1x8x32xf32>
    %1 = vector.shape_cast %0 : vector<1x8x32xf32> to vector<8x32xf32>
    %2 = vector.shape_cast %1 : vector<8x32xf32> to vector<1x8x32xf32>
    %3 = vector.shape_cast %2 : vector<1x8x32xf32> to vector<1x8x32xf32>
    %4 = vector.broadcast %3 : vector<1x8x32xf32> to vector<4x8x32xf32>
    %c0_2 = arith.constant 0 : index
    %c0_3 = arith.constant 0 : index
    %c0_4 = arith.constant 0 : index
    %5 = vector.load %arg3[%c0_2, %c0_3, %c0_4] : memref<4x32x8xf32, #tpu.memory_space<vmem>>, vector<4x32x8xf32>
    "tpu.trace_start"() <{level = 10 : i32, message = "hle,hed->hld"}> : () -> ()
    %cst = arith.constant dense<0.000000e+00> : vector<4x8x8xf32>
    %6 = tpu.matmul %4, %5, %cst {dimension_numbers = #tpu.dot_dimension_numbers<[2], [1], [1], [2], [0, 0, 0, 1, 1, 2], [0], [0]>} : vector<4x8x32xf32>, vector<4x32x8xf32>, vector<4x8x8xf32> -> vector<4x8x8xf32>
    "tpu.trace_stop"() : () -> ()
    %c0_5 = arith.constant 0 : index
    %c0_6 = arith.constant 0 : index
    %c0_7 = arith.constant 0 : index
    %7 = vector.load %arg4[%c0_5, %c0_6, %c0_7] : memref<4x1x8xf32, #tpu.memory_space<vmem>>, vector<4x1x8xf32>
    %8 = vector.broadcast %7 : vector<4x1x8xf32> to vector<4x8x8xf32>
    %9 = arith.addf %6, %8 : vector<4x8x8xf32>
    %c0_8 = arith.constant 0 : index
    %c0_9 = arith.constant 0 : index
    %c0_10 = arith.constant 0 : index
    %c0_11 = arith.constant 0 : index
    %10 = vector.load %arg5[%c0_8, %c0_9, %c0_10, %c0_11] : memref<1x4x8x8xf32, #tpu.memory_space<vmem>>, vector<1x4x8x8xf32>
    %11 = vector.shape_cast %10 : vector<1x4x8x8xf32> to vector<4x8x8xf32>
    %12 = vector.shape_cast %9 : vector<4x8x8xf32> to vector<1x4x8x8xf32>
    tpu.vector_store %arg5[%c0_8, %c0_9, %c0_10, %c0_11], %12 {strides = array<i32>} : memref<1x4x8x8xf32, #tpu.memory_space<vmem>>, vector<1x4x8x8xf32>,
    return
  }
  func.func @transform_0(%arg0: i32, %arg1: i32) -> (i32, i32, i32) {
    %c0_i32 = arith.constant 0 : i32
    %c0_i32_0 = arith.constant 0 : i32
    return %arg0, %arg1, %c0_i32 : i32, i32, i32
  }
  func.func @transform_1(%arg0: i32, %arg1: i32) -> (i32, i32, i32) {
    %c0_i32 = arith.constant 0 : i32
    %c0_i32_0 = arith.constant 0 : i32
    %c0_i32_1 = arith.constant 0 : i32
    %c0_i32_2 = arith.constant 0 : i32
    return %c0_i32, %c0_i32_0, %c0_i32_1 : i32, i32, i32
  }
  func.func @transform_2(%arg0: i32, %arg1: i32) -> (i32, i32, i32) {
    %c0_i32 = arith.constant 0 : i32
    %c0_i32_0 = arith.constant 0 : i32
    %c0_i32_1 = arith.constant 0 : i32
    %c0_i32_2 = arith.constant 0 : i32
    return %c0_i32, %c0_i32_0, %c0_i32_1 : i32, i32, i32
  }
  func.func @transform_3(%arg0: i32, %arg1: i32) -> (i32, i32, i32, i32) {
    %c0_i32 = arith.constant 0 : i32
    %c0_i32_0 = arith.constant 0 : i32
    %c0_i32_1 = arith.constant 0 : i32
    return %arg0, %c0_i32, %arg1, %c0_i32_0 : i32, i32, i32, i32
  }
}

</mosaic_0001>

<bundles_post_ra>
// kernel: tpu_custom_call.1
= control target key start
LH: loop header
LB: loop body
LE: loop exit
PB: predicated region body
PF: predicated region fallthrough
CT: control target
= control target key end

     0   :  { %8 = vsyncpa [#allocation3], 0  ;;  %s750_s0 = inlined_call_operand.vmem [shape: f32[2,8,32], index: 0, kind: input, shape index: {}]   ;;  %s751_s1 = inlined_call_operand.vmem [shape: f32[4,32,8], index: 1, kind: input, shape index: {}]   ;;  %s752_s2 = inlined_call_operand.vmem [shape: f32[4,1,8], index: 2, kind: input, shape index: {}]   ;;  %s753_s3 = inlined_call_operand.hbm [shape: f32[2,4,8,8], index: 3, kind: output, shape index: {}]  }
   0x1   :  { %10 = vsyncpa [#allocation3 + $0x1], 0  ;;  %s585_s12 = smov 0   ;;  %s587_s13 = smov 0  }
   0x2   :  { %s589_s14 = smov 0   ;;  %s591_s15 = smov 0  }
   0x3   :  { %s593_s16 = smov 0   ;;  %s595_s17 = smov 0  }
   0x4 LB: > { %s405_s18 = sadd.s32 4294967295, %s561_s17   ;;  %s406_s19 = sadd.s32 4294967294, %s561_s17   ;;  %s561_s17 = sphi %s595_s17, %s16_s17   ;;  %s557_s16 = sphi %s593_s16, %s760_s16   ;;  %s553_s15 = sphi %s591_s15, %s759_s15   ;;  %s549_s14 = sphi %s589_s14, %s758_s14   ;;  %s545_s13 = sphi %s587_s13, %s757_s13   ;;  %s541_s12 = sphi %s585_s12, %s756_s12  }
   0x5   : > { %s28_s20 = sadd.s32 1, %s557_s16  ;;  %s107_s21 = sadd.s32 1, %s549_s14 }
   0x6   : > { %p30_p0 = scmp.ge.s32.totalorder %s28_s20, 2  ;;  %p117_p1 = scmp.ne.s32.totalorder %s549_s14, %s545_s13 }
   0x7   : > { %p118_p2 = scmp.eq.s32.totalorder %s405_s18, 1  ;;  %p123_p3 = scmp.ne.s32.totalorder %s545_s13, %s541_s12 }
   0x8   : > { %s762_s20 = smov (%p30_p0, %s28_s20), 0  ;;  %p124_p5 = scmp.eq.s32.totalorder %s406_s19, 1 }
   0x9   : > { %p625_p4 = por %p118_p2, %p117_p1  ;;  %s102_s23 = ssub.s32 %s557_s16, %s762_s20 }
   0xa   : > { %p409_p6 = scmp.ge.s32.totalorder %s561_s17, 1  ;;  %p105_p7 = scmp.eq.s32.totalorder %s102_s23, 0 }
   0xb   : > { %p632_p8 = por %p124_p5, %p123_p3  ;;  %p158_p9 = scmp.lt.s32.totalorder %s561_s17, 3 }
   0xc   : > { %s638_s25 = scalar_select %p105_p7, %s549_s14, %s107_s21  }
   0xd   : > { %p159_p10 = pnand %p409_p6, %p158_p9 }
   0xe   : > { %p184_p11 = scmp.lt.s32.totalorder (!%p159_p10), %s553_s15, 1  ;;  %s181_s29 = sand.u32 (!%p159_p10), 1, %s545_s13  }
   0xf   : > { %162 = sbr.rel (%p159_p10) target bundleno = 167 (0xa7), region = 32  ;;  %s410_s30 = sshll.u32 (!%p159_p10), %s181_s29, 5 }
  0x10   : > { %s421_s4 = sshll.u32 (!%p159_p10), %s553_s15, 5  ;;  %s314_s28 = scalar_lea.sflag (!%p159_p10), [#allocation3], %s181_s29 }
  0x11   : > { %s326_s11 = scalar_lea.hbm (!%p159_p10), %s753_s3, %s421_s4 }
  0x12   : > { %s329_s27 = sshll.u32 (!%p159_p10), %s326_s11, 4  ;;  %s330_s27 = int_to_ptr.hbm [resolvable:$true] %s329_s27 }
  0x14   : > { %v203_v0 = vld [vmem:[%s751_s1 + $0x58] sm:$0xff]  ;;  %v202_v2 = vld [vmem:[%s751_s1 + $0x50] sm:$0xff]  ;;  %v201_v4 = vld [vmem:[%s751_s1 + $0x48] sm:$0xff]  ;;  %s185_s23 = scalar_select %p184_p11, %s553_s15, 1  ;;  %vm224_vm0 = vcmask 261120   ;;  %vm308_vm1 = vcmask 64512  }
  0x15   : > { %v207_v1 = vld [vmem:[%s751_s1 + $0x78] sm:$0xff]  ;;  %280 = vmatpush.msra.mxu2 %v203_v0  ;;  %v206_v3 = vld [vmem:[%s751_s1 + $0x70] sm:$0xff]  ;;  %v205_v5 = vld [vmem:[%s751_s1 + $0x68] sm:$0xff]  ;;  %s183_s15 = scalar_lea.vmem [#allocation2], %s410_s30  ;;  %s497_s30 = sshra.s32 %s330_s27, 4  ;;  %s498_s30 = int_to_ptr.hbm [resolvable:$true] %s497_s30 }
  0x16   : > { %300 = vmatpush.msra.mxu3 %v207_v1  ;;  %v195_v6 = vld [vmem:[%s751_s1 + $0x18] sm:$0xff]  ;;  %v194_v8 = vld [vmem:[%s751_s1 + $0x10] sm:$0xff]  ;;  %v200_v10 = vld [vmem:[%s751_s1 + $0x40] sm:$0xff]  ;;  %s411_s7 = sshll.u32 %s185_s23, 3  ;;  %s327_s26 = sshll.u32 %s183_s15, 4  ;;  %s328_s26 = int_to_ptr.vmem [resolvable:$true] %s327_s26 }
  0x17   : > { %v199_v7 = vld [vmem:[%s751_s1 + $0x38] sm:$0xff]  ;;  %281 = vmatpush.msra.mxu2 %v202_v2  ;;  %v198_v9 = vld [vmem:[%s751_s1 + $0x30] sm:$0xff]  ;;  %240 = vmatpush.msra.mxu0 %v195_v6  ;;  %v204_v11 = vld [vmem:[%s751_s1 + $0x60] sm:$0xff]  ;;  %s190_s10 = scalar_lea.vmem %s750_s0, %s411_s7  ;;  %s499_s4 = scalar_lea.hbm %s498_s30, 32 }
  0x18   : > { %301 = vmatpush.msra.mxu3 %v206_v3  ;;  %260 = vmatpush.msra.mxu1 %v199_v7  ;;  %v193_v12 = vld [vmem:[%s751_s1 + $0x8] sm:$0xff]  ;;  %v191_v14 = vld [vmem:[%s190_s10] sm:$0xff]  ;;  %p500_p12 = scmp.ne.s32.totalorder %s498_s30, %s499_s4  ;;  %s503_s7 = scalar_lea.hbm %s753_s3, 64 }
  0x19   : > { %282 = vmatpush.msra.mxu2 %v201_v4  ;;  %v197_v13 = vld [vmem:[%s751_s1 + $0x28] sm:$0xff]  ;;  %241 = vmatpush.msra.mxu0 %v194_v8  ;;  %v192_v15 = vld [vmem:[%s751_s1] sm:$0xff]  ;;  %p504_p1 = scmp.lt.s32.totalorder %s498_s30, %s753_s3  ;;  %p505_p2 = scmp.lt.s32.totalorder %s503_s7, %s499_s4 }
  0x1a   : > { %302 = vmatpush.msra.mxu3 %v205_v5  ;;  %261 = vmatpush.msra.mxu1 %v198_v9  ;;  %v196_v16 = vld [vmem:[%s751_s1 + $0x20] sm:$0xff]  ;;  %p501_p13 = pnand %p500_p12, %p625_p4 }
  0x1b   : > { %283 = vmatpush.msra.mxu2 %v200_v10  ;;  %242 = vmatpush.msra.mxu0 %v193_v12  ;;  %v479_v17 = vld [vmem:[%s752_s2] ss:$0 sm:$0xff]  ;;  %v480_v18 = vld [vmem:[%s752_s2 + $0x1] ss:$0 sm:$0xff]  ;;  %v481_v19 = vld [vmem:[%s752_s2 + $0x2] ss:$0 sm:$0xff]  ;;  %p506_p3 = por %p505_p2, %p504_p1 }
  0x1c   : > { %303 = vmatpush.msra.mxu3 %v204_v11  ;;  %414 = vmatmul.msk.f32.vlgmr.msra.gmra.mxu2 %vm224_vm0, %v191_v14  ;;  %v482_v20 = vld [vmem:[%s752_s2 + $0x3] ss:$0 sm:$0xff]  ;;  %p502_p0 = pneg %p501_p13 }
  0x1d   : > { %415 = vmatmul.msk.f32.vlgmr.msra.gmra.mxu3 %vm224_vm0, %v191_v14  ;;  %262 = vmatpush.msra.mxu1 %v197_v13 }
  0x1e   : > { %243 = vmatpush.msra.mxu0 %v192_v15  ;;  %p507_p5 = pnand %p506_p3, %p502_p0 }
  0x1f   : > { %263 = vmatpush.msra.mxu1 %v196_v16  ;;  %412 = vmatmul.msk.f32.vlgmr.msra.gmra.mxu0 %vm224_vm0, %v191_v14 }
  0x20   : > { %413 = vmatmul.msk.f32.vlgmr.msra.gmra.mxu1 %vm224_vm0, %v191_v14 }
  0x9c   : > { %v245_v21 = vpop.f32.mrf.mxu0 }
  0x9d   : > { %v265_v22 = vpop.f32.mrf.mxu1  ;;  %v246_v23 = vadd.f32 %v479_v17, %v245_v21 }
  0x9e   : > { %v266_v24 = vadd.f32 %v480_v18, %v265_v22 }
  0x9f   : > { %v285_v25 = vpop.f32.mrf.mxu2  ;;  %309 = vst.msk [vmem:[%s183_s15] sm:$0xff] %vm308_vm1, %v246_v23 }
  0xa0   : > { %v305_v26 = vpop.f32.mrf.mxu3  ;;  %v286_v27 = vadd.f32 %v481_v19, %v285_v25  ;;  %310 = vst.msk [vmem:[%s183_s15 + $0x8] sm:$0xff] %vm308_vm1, %v266_v24 }
  0xa1   : > { %v306_v28 = vadd.f32 %v482_v20, %v305_v26 }
  0xa2   : > { %311 = vst.msk [vmem:[%s183_s15 + $0x10] sm:$0xff] %vm308_vm1, %v286_v27 }
  0xa3   : > { %312 = vst.msk [vmem:[%s183_s15 + $0x18] sm:$0xff] %vm308_vm1, %v306_v28 }
  0xa4   : > { %510 = shalt.err (!%p507_p5)
}
  0xa5   : > { %s563_s29 = smov 128   ;;  %s564_s10 = smov 8  }
  0xa6   : > { %422 = dma.vmem_to_hbm [thread:$0]  (%p625_p4), %s328_s26, 512, %s330_s27, %s314_s28, %s563_s29, %s563_s29, %s564_s10  }
  0xa7 PF: > { %p428_p6 = scmp.ge.s32.totalorder %s561_s17, 2  ;;  %s344_s11 = sand.u32 1, %s541_s12  }
  0xa8   : > { %s345_s18 = scalar_lea.sflag [#allocation3], %s344_s11 }
  0xa9   : > { %p425_p7 = pnand %p428_p6, %p632_p8 }
  0xab   : > { %p426_p9 = pneg %p425_p7 }
  0xad   : > { %536 = dma.done.wait (%p426_p9), %s345_s18, 512  }
  0xae   : > { %538 = vsyncadd (%p426_p9), %s345_s18, 4294966784  ;;  %s16_s17 = sadd.s32 1, %s561_s17   ;;  %s756_s12 = smov %s545_s13 }
  0xaf   : > { %p13_p10 = scmp.ge.s32.totalorder %s16_s17, 4   ;;  %s757_s13 = smov %s549_s14 }
  0xb0   : > { %s758_s14 = smov %s638_s25  ;;  %s759_s15 = smov %s557_s16 }
  0xb1   : > { %s760_s16 = smov %s762_s20  ;;  %15 = sbr.rel (!%p13_p10) target bundleno = 4 (0x4), region = 67 }
  0xb6   :  { %351 = vsyncpa [#allocation3], 1 }
  0xb7   :  { %353 = vsyncpa [#allocation3 + $0x1], 1 }

</bundles_post_ra>
